<compile_context>
chip_gen: v7x
topology: tpu7x:2x2x1
jax: 0.10.0
libtpu: 0.0.40
codegen_flags: <defaults>
</compile_context>

<pallas_src>
import jax
import jax.numpy as jnp
from jax.experimental import pallas as pl
from jax.experimental.pallas import tpu as pltpu


SUBLANE = 8
K_IN    = 2 * 14 * 14     # 392: shared activation row = [ch0(196) | ch1(196)]
K_REC   = 14 * 14         # 196
N_BIG   = 384             # [child(128) | rec_ch0_l1(128) | rec_ch1_l1(128)]
N_HID   = 128             # 75 -> 128 / 50 -> 128 lane padding
N_OUT   = 128             # lane-dense output slab

CHILD_OUT = 20
REC_OUT   = 10
RES_COL   = 0             # res  -> out[:, 0:20]
OUT1_COL  = 32            # out1 -> out[:, 32:42]
OUT2_COL  = 64            # out2 -> out[:, 64:74]


def _round_up(x, m):
    return (x + m - 1) // m * m


# ----------------------------------------------------------------------------
# Fused kernel: child linear + recognition MLP (both channels), one output slab
# ----------------------------------------------------------------------------
def fused_aux_kernel(x_ref, wbig_ref, w2_ref, w3_ref, bias_ref, out_ref):
    # Single activation DMA per row; bf16 cast happens in VMEM (VPU, free vs HBM).
    xb = x_ref[...].astype(jnp.bfloat16)                                  # (tb, 392)

    # Fused MXU pass: child linear + recognition layer-1 for both channels.
    t = jnp.dot(xb, wbig_ref[...], preferred_element_type=jnp.float32)   # (tb, 384)
    t = t + bias_ref[0:1, :]

    child = t[:, 0:128]                                    # res (+bc), 20 real cols

    h1_c0 = jnp.maximum(t[:, 128:256], 0.0).astype(jnp.bfloat16)
    h1_c1 = jnp.maximum(t[:, 256:384], 0.0).astype(jnp.bfloat16)

    b2 = bias_ref[1:2, 0:128]
    h2_c0 = jnp.maximum(
        jnp.dot(h1_c0, w2_ref[...], preferred_element_type=jnp.float32) + b2, 0.0
    ).astype(jnp.bfloat16)
    h2_c1 = jnp.maximum(
        jnp.dot(h1_c1, w2_ref[...], preferred_element_type=jnp.float32) + b2, 0.0
    ).astype(jnp.bfloat16)

    # Layer 3: per-channel w3 copies sit at distinct output-column offsets, so
    # both channels accumulate into the same lane-dense slab.
    rec = (jnp.dot(h2_c0, w3_ref[0:128, :], preferred_element_type=jnp.float32)
           + jnp.dot(h2_c1, w3_ref[128:256, :], preferred_element_type=jnp.float32))

    out_ref[...] = child + rec + bias_ref[2:3, 0:128]


def _fused_pallas_call(bp, tb, x_itemsize):
    grid = (pl.cdiv(bp, tb),)

    def w_spec(shape):
        return pl.BlockSpec(shape, lambda i: (0, 0))       # resident across grid

    # honest advisory cost estimate for the XLA scheduler
    flops = bp * 2 * (K_IN * N_BIG + 2 * N_HID * N_HID + 2 * N_HID * N_OUT)
    bytes_accessed = (bp * K_IN * x_itemsize                               # x in
                      + bp * N_OUT * 4                                     # out
                      + (K_IN * N_BIG + N_HID * N_HID + 2 * N_HID * N_OUT) * 2
                      + SUBLANE * N_BIG * 4)                               # weights

    return pl.pallas_call(
        fused_aux_kernel,
        out_shape=jax.ShapeDtypeStruct((bp, N_OUT), jnp.float32),
        grid_spec=pltpu.PrefetchScalarGridSpec(
            num_scalar_prefetch=0,
            grid=grid,
            in_specs=[
                pl.BlockSpec((tb, K_IN), lambda i: (i, 0)),      # activations
                w_spec((K_IN, N_BIG)),                           # fused layer-1 W
                w_spec((N_HID, N_HID)),                          # w2 (shared)
                w_spec((2 * N_HID, N_OUT)),                      # w3 [ch0; ch1]
                w_spec((SUBLANE, N_BIG)),                        # bias slab
            ],
            out_specs=pl.BlockSpec((tb, N_OUT), lambda i: (i, 0)),
        ),
        compiler_params=pltpu.CompilerParams(
            dimension_semantics=("parallel",),       # batch tiles -> both TCs on v7x
            vmem_limit_bytes=32 * 1024 * 1024,       # portable across v5e/v6e/v7x
        ),
        cost_estimate=pl.CostEstimate(
            flops=flops, transcendentals=0, bytes_accessed=bytes_accessed),
    )


# ----------------------------------------------------------------------------
# Parameter prep (done once): fuse / zero-pad / place at output offsets, bf16
# ----------------------------------------------------------------------------
def prepare_params(params):
    wc, bc = params["wc"], params["bc"]      # (392, 20), (20,)
    w1, b1 = params["w1"], params["b1"]      # (196, 75), (75,)
    w2, b2 = params["w2"], params["b2"]      # (75, 50),  (50,)
    w3, b3 = params["w3"], params["b3"]      # (50, 10),  (10,)

    # Fused first-layer weight: [child | rec-ch0-l1 | rec-ch1-l1] column blocks.
    wbig = jnp.zeros((K_IN, N_BIG), jnp.float32)
    wbig = wbig.at[:, 0:CHILD_OUT].set(wc)
    wbig = wbig.at[0:K_REC, 128:128 + 75].set(w1)           # ch0 rows 0..195
    wbig = wbig.at[K_REC:K_IN, 256:256 + 75].set(w1)        # ch1 rows 196..391

    w2p = jnp.zeros((N_HID, N_HID), jnp.float32).at[0:75, 0:50].set(w2)

    # Per-channel w3 copies at distinct output-column offsets.
    w3p = jnp.zeros((2 * N_HID, N_OUT), jnp.float32)
    w3p = w3p.at[0:50, OUT1_COL:OUT1_COL + REC_OUT].set(w3)
    w3p = w3p.at[N_HID:N_HID + 50, OUT2_COL:OUT2_COL + REC_OUT].set(w3)

    # One (8, 384) f32 bias slab: row 0 = fused layer-1 bias, row 1 = b2,
    # row 2 = output-offset b3 for both channels.
    bias = jnp.zeros((SUBLANE, N_BIG), jnp.float32)
    bias = bias.at[0, 0:CHILD_OUT].set(bc)
    bias = bias.at[0, 128:128 + 75].set(b1)
    bias = bias.at[0, 256:256 + 75].set(b1)
    bias = bias.at[1, 0:50].set(b2)
    bias = bias.at[2, OUT1_COL:OUT1_COL + REC_OUT].set(b3)
    bias = bias.at[2, OUT2_COL:OUT2_COL + REC_OUT].set(b3)

    return dict(wbig=wbig.astype(jnp.bfloat16),
                w2=w2p.astype(jnp.bfloat16),
                w3=w3p.astype(jnp.bfloat16),
                bias=bias)                    # biases stay f32 (added to f32 acc)


# ----------------------------------------------------------------------------
# Auxiliary.forward
# ----------------------------------------------------------------------------
def auxiliary_forward(x, packed_params, flatten=False, block_rows=1024):
    # Both paths consume the same bytes per sample: child = flatten(x) (B,392),
    # recognition = view(-1,2,14,14) whose per-channel 196-slices are the two
    # halves of the same 392-float row.  A single free reshape feeds the fused
    # kernel; with the Linear(392,20) child stand-in the `flatten` flag does
    # not change the computation.
    del flatten
    x2d = x.reshape(-1, K_IN)
    b = x2d.shape[0]

    bp = _round_up(b, SUBLANE)
    if bp != b:                 # only copies for ragged (tiny) batches
        x2d = jnp.pad(x2d, ((0, bp - b), (0, 0)))

    # Tile rows: cap for VMEM but aim for >= 2 grid steps (v7x megacore).
    tb = min(block_rows, max(SUBLANE, _round_up((bp + 1) // 2, SUBLANE)))

    out = _fused_pallas_call(bp, tb, x2d.dtype.itemsize)(
        x2d,
        packed_params["wbig"], packed_params["w2"],
        packed_params["w3"], packed_params["bias"],
    )

    res  = out[:b, RES_COL:RES_COL + CHILD_OUT]
    out1 = out[:b, OUT1_COL:OUT1_COL + REC_OUT]
    out2 = out[:b, OUT2_COL:OUT2_COL + REC_OUT]
    return res, out1, out2


# ----------------------------------------------------------------------------
# Deterministic parameter init (nn.Linear shapes; stored as (in, out))
# ----------------------------------------------------------------------------
def init_params(key):
    def dense(k, fan_in, fan_out):
        kw, kb = jax.random.split(k)
        scale = 1.0 / jnp.sqrt(jnp.float32(fan_in))
        w = jax.random.uniform(kw, (fan_in, fan_out), jnp.float32, -scale, scale)
        b = jax.random.uniform(kb, (fan_out,), jnp.float32, -scale, scale)
        return w, b

    k1, k2, k3, kc = jax.random.split(key, 4)
    w1, b1 = dense(k1, 14 * 14, 75)        # linear_1
    w2, b2 = dense(k2, 75, 50)             # linear_2
    w3, b3 = dense(k3, 50, 10)             # linear_3
    wc, bc = dense(kc, 2 * 14 * 14, 20)    # synthetic child model
    return dict(w1=w1, b1=b1, w2=w2, b2=b2, w3=w3, b3=b3, wc=wc, bc=bc)


# ----------------------------------------------------------------------------
# Pure-JAX f32 reference (correctness check)
# ----------------------------------------------------------------------------
def reference_forward(x, params, flatten=False):
    x = x.astype(jnp.float32)
    res = x.reshape(x.shape[0], -1) @ params["wc"] + params["bc"]
    if flatten:
        x = x.reshape(-1, 2, 14, 14)
    B = x.shape[0]

    def mlp(v):
        h = jnp.maximum(v @ params["w1"] + params["b1"], 0.0)
        h = jnp.maximum(h @ params["w2"] + params["b2"], 0.0)
        return h @ params["w3"] + params["b3"]

    x1 = x[:, 0, :, :].reshape(B, 196)
    x2 = x[:, 1, :, :].reshape(B, 196)
    return res, mlp(x1), mlp(x2)


if __name__ == "__main__":
    key = jax.random.PRNGKey(0)
    kx, kp = jax.random.split(key)

    params = init_params(kp)
    packed = prepare_params(params)
    x = jax.random.normal(kx, (2, 2, 14, 14), jnp.float32)   # B=2, NCHW

    # bf16 weights/activations with f32 accumulation -> relaxed tolerance.
    TOL = dict(atol=3e-2, rtol=3e-2)

    # flatten=False path
    res, out1, out2 = auxiliary_forward(x, packed, flatten=False)
    jax.block_until_ready((res, out1, out2))
    r_res, r_out1, r_out2 = reference_forward(x, params, flatten=False)
    assert res.shape == (2, 20) and out1.shape == (2, 10) and out2.shape == (2, 10)
    assert jnp.allclose(res, r_res, **TOL)
    assert jnp.allclose(out1, r_out1, **TOL)
    assert jnp.allclose(out2, r_out2, **TOL)

    # flatten=True path (x already (B,2,14,14); the view is a no-op reinterpret)
    res_f, out1_f, out2_f = auxiliary_forward(x, packed, flatten=True)
    jax.block_until_ready((res_f, out1_f, out2_f))
    rf_res, rf_out1, rf_out2 = reference_forward(x, params, flatten=True)
    assert jnp.allclose(res_f, rf_res, **TOL)
    assert jnp.allclose(out1_f, rf_out1, **TOL)
    assert jnp.allclose(out2_f, rf_out2, **TOL)

    print("KERNEL_OK")
</pallas_src>

<mosaic_0001>
module attributes {stable_mosaic.version = 11 : i64} {
  func.func @fused_aux_kernel(%arg0: i32, %arg1: memref<8x392xf32, #tpu.memory_space<vmem>>, %arg2: memref<392x384xbf16, #tpu.memory_space<vmem>>, %arg3: memref<128x128xbf16, #tpu.memory_space<vmem>>, %arg4: memref<256x128xbf16, #tpu.memory_space<vmem>>, %arg5: memref<8x384xf32, #tpu.memory_space<vmem>>, %arg6: memref<8x128xf32, #tpu.memory_space<vmem>>) attributes {dimension_semantics = [#tpu.dimension_semantics<parallel>], iteration_bounds = array<i64: 1>, scalar_prefetch = 0 : i64, scratch_operands = 0 : i64, tpu.core_type = #tpu.core_type<tc>, window_params = [{transform_indices = @transform_0, window_bounds = array<i64: 8, 392>}, {pipeline_mode = #tpu.pipeline_mode<synchronous>, transform_indices = @transform_1, window_bounds = array<i64: 392, 384>}, {pipeline_mode = #tpu.pipeline_mode<synchronous>, transform_indices = @transform_2, window_bounds = array<i64: 128, 128>}, {pipeline_mode = #tpu.pipeline_mode<synchronous>, transform_indices = @transform_3, window_bounds = array<i64: 256, 128>}, {pipeline_mode = #tpu.pipeline_mode<synchronous>, transform_indices = @transform_4, window_bounds = array<i64: 8, 384>}, {transform_indices = @transform_5, window_bounds = array<i64: 8, 128>}]} {
    %c0 = arith.constant 0 : index
    %c0_0 = arith.constant 0 : index
    %0 = vector.load %arg1[%c0, %c0_0] : memref<8x392xf32, #tpu.memory_space<vmem>>, vector<8x392xf32>
    %1 = arith.truncf %0 : vector<8x392xf32> to vector<8x392xbf16>
    %c0_1 = arith.constant 0 : index
    %c0_2 = arith.constant 0 : index
    %2 = vector.load %arg2[%c0_1, %c0_2] : memref<392x384xbf16, #tpu.memory_space<vmem>>, vector<392x384xbf16>
    %cst = arith.constant dense<0.000000e+00> : vector<8x384xf32>
    %3 = tpu.matmul %1, %2, %cst {dimension_numbers = #tpu.dot_dimension_numbers<[1], [0], [0], [1], [0, 0, 1, 1], [], []>} : vector<8x392xbf16>, vector<392x384xbf16>, vector<8x384xf32> -> vector<8x384xf32>
    %c0_3 = arith.constant 0 : index
    %c0_4 = arith.constant 0 : index
    %4 = vector.load %arg5[%c0_3, %c0_4] : memref<8x384xf32, #tpu.memory_space<vmem>>, vector<1x384xf32>
    %5 = vector.broadcast %4 : vector<1x384xf32> to vector<8x384xf32>
    %6 = arith.addf %3, %5 : vector<8x384xf32>
    %7 = vector.extract_strided_slice %6 {offsets = [0, 0], sizes = [8, 128], strides = [1, 1]} : vector<8x384xf32> to vector<8x128xf32>
    %8 = vector.extract_strided_slice %6 {offsets = [0, 128], sizes = [8, 128], strides = [1, 1]} : vector<8x384xf32> to vector<8x128xf32>
    %cst_5 = arith.constant 0.000000e+00 : f32
    %9 = vector.broadcast %cst_5 : f32 to vector<8x128xf32>
    %10 = arith.maximumf %8, %9 : vector<8x128xf32>
    %11 = arith.truncf %10 : vector<8x128xf32> to vector<8x128xbf16>
    %12 = vector.extract_strided_slice %6 {offsets = [0, 256], sizes = [8, 128], strides = [1, 1]} : vector<8x384xf32> to vector<8x128xf32>
    %cst_6 = arith.constant 0.000000e+00 : f32
    %13 = vector.broadcast %cst_6 : f32 to vector<8x128xf32>
    %14 = arith.maximumf %12, %13 : vector<8x128xf32>
    %15 = arith.truncf %14 : vector<8x128xf32> to vector<8x128xbf16>
    %c1 = arith.constant 1 : index
    %c0_7 = arith.constant 0 : index
    %16 = vector.load %arg5[%c1, %c0_7] : memref<8x384xf32, #tpu.memory_space<vmem>>, vector<1x128xf32>
    %c0_8 = arith.constant 0 : index
    %c0_9 = arith.constant 0 : index
    %17 = vector.load %arg3[%c0_8, %c0_9] : memref<128x128xbf16, #tpu.memory_space<vmem>>, vector<128x128xbf16>
    %cst_10 = arith.constant dense<0.000000e+00> : vector<8x128xf32>
    %18 = tpu.matmul %11, %17, %cst_10 {dimension_numbers = #tpu.dot_dimension_numbers<[1], [0], [0], [1], [0, 0, 1, 1], [], []>} : vector<8x128xbf16>, vector<128x128xbf16>, vector<8x128xf32> -> vector<8x128xf32>
    %19 = vector.broadcast %16 : vector<1x128xf32> to vector<8x128xf32>
    %20 = arith.addf %18, %19 : vector<8x128xf32>
    %cst_11 = arith.constant 0.000000e+00 : f32
    %21 = vector.broadcast %cst_11 : f32 to vector<8x128xf32>
    %22 = arith.maximumf %20, %21 : vector<8x128xf32>
    %23 = arith.truncf %22 : vector<8x128xf32> to vector<8x128xbf16>
    %c0_12 = arith.constant 0 : index
    %c0_13 = arith.constant 0 : index
    %24 = vector.load %arg3[%c0_12, %c0_13] : memref<128x128xbf16, #tpu.memory_space<vmem>>, vector<128x128xbf16>
    %cst_14 = arith.constant dense<0.000000e+00> : vector<8x128xf32>
    %25 = tpu.matmul %15, %24, %cst_14 {dimension_numbers = #tpu.dot_dimension_numbers<[1], [0], [0], [1], [0, 0, 1, 1], [], []>} : vector<8x128xbf16>, vector<128x128xbf16>, vector<8x128xf32> -> vector<8x128xf32>
    %26 = vector.broadcast %16 : vector<1x128xf32> to vector<8x128xf32>
    %27 = arith.addf %25, %26 : vector<8x128xf32>
    %cst_15 = arith.constant 0.000000e+00 : f32
    %28 = vector.broadcast %cst_15 : f32 to vector<8x128xf32>
    %29 = arith.maximumf %27, %28 : vector<8x128xf32>
    %30 = arith.truncf %29 : vector<8x128xf32> to vector<8x128xbf16>
    %c0_16 = arith.constant 0 : index
    %c0_17 = arith.constant 0 : index
    %31 = vector.load %arg4[%c0_16, %c0_17] : memref<256x128xbf16, #tpu.memory_space<vmem>>, vector<128x128xbf16>
    %cst_18 = arith.constant dense<0.000000e+00> : vector<8x128xf32>
    %32 = tpu.matmul %23, %31, %cst_18 {dimension_numbers = #tpu.dot_dimension_numbers<[1], [0], [0], [1], [0, 0, 1, 1], [], []>} : vector<8x128xbf16>, vector<128x128xbf16>, vector<8x128xf32> -> vector<8x128xf32>
    %c128 = arith.constant 128 : index
    %c0_19 = arith.constant 0 : index
    %33 = vector.load %arg4[%c128, %c0_19] : memref<256x128xbf16, #tpu.memory_space<vmem>>, vector<128x128xbf16>
    %cst_20 = arith.constant dense<0.000000e+00> : vector<8x128xf32>
    %34 = tpu.matmul %30, %33, %cst_20 {dimension_numbers = #tpu.dot_dimension_numbers<[1], [0], [0], [1], [0, 0, 1, 1], [], []>} : vector<8x128xbf16>, vector<128x128xbf16>, vector<8x128xf32> -> vector<8x128xf32>
    %35 = arith.addf %32, %34 : vector<8x128xf32>
    %36 = arith.addf %7, %35 : vector<8x128xf32>
    %c2 = arith.constant 2 : index
    %c0_21 = arith.constant 0 : index
    %37 = vector.load %arg5[%c2, %c0_21] : memref<8x384xf32, #tpu.memory_space<vmem>>, vector<1x128xf32>
    %38 = vector.broadcast %37 : vector<1x128xf32> to vector<8x128xf32>
    %39 = arith.addf %36, %38 : vector<8x128xf32>
    %c0_22 = arith.constant 0 : index
    %c0_23 = arith.constant 0 : index
    %40 = vector.load %arg6[%c0_22, %c0_23] : memref<8x128xf32, #tpu.memory_space<vmem>>, vector<8x128xf32>
    tpu.vector_store %arg6[%c0_22, %c0_23], %39 {strides = array<i32>} : memref<8x128xf32, #tpu.memory_space<vmem>>, vector<8x128xf32>,
    return
  }
  func.func @transform_0(%arg0: i32) -> (i32, i32) {
    %c0_i32 = arith.constant 0 : i32
    %c0_i32_0 = arith.constant 0 : i32
    return %arg0, %c0_i32 : i32, i32
  }
  func.func @transform_1(%arg0: i32) -> (i32, i32) {
    %c0_i32 = arith.constant 0 : i32
    %c0_i32_0 = arith.constant 0 : i32
    %c0_i32_1 = arith.constant 0 : i32
    return %c0_i32, %c0_i32_0 : i32, i32
  }
  func.func @transform_2(%arg0: i32) -> (i32, i32) {
    %c0_i32 = arith.constant 0 : i32
    %c0_i32_0 = arith.constant 0 : i32
    %c0_i32_1 = arith.constant 0 : i32
    return %c0_i32, %c0_i32_0 : i32, i32
  }
  func.func @transform_3(%arg0: i32) -> (i32, i32) {
    %c0_i32 = arith.constant 0 : i32
    %c0_i32_0 = arith.constant 0 : i32
    %c0_i32_1 = arith.constant 0 : i32
    return %c0_i32, %c0_i32_0 : i32, i32
  }
  func.func @transform_4(%arg0: i32) -> (i32, i32) {
    %c0_i32 = arith.constant 0 : i32
    %c0_i32_0 = arith.constant 0 : i32
    %c0_i32_1 = arith.constant 0 : i32
    return %c0_i32, %c0_i32_0 : i32, i32
  }
  func.func @transform_5(%arg0: i32) -> (i32, i32) {
    %c0_i32 = arith.constant 0 : i32
    %c0_i32_0 = arith.constant 0 : i32
    return %arg0, %c0_i32 : i32, i32
  }
}

</mosaic_0001>

<bundles_post_ra>
// kernel: tpu_custom_call.1
= control target key start
LH: loop header
LB: loop body
LE: loop exit
PB: predicated region body
PF: predicated region fallthrough
CT: control target
= control target key end

     0   :  { %10 = vsyncpa [#allocation3], 0  ;;  %s1852_s0 = inlined_call_operand.hbm [shape: f32[8,392], index: 0, kind: input, shape index: {}]   ;;  %s1853_s1 = inlined_call_operand.hbm [shape: bf16[392,384], index: 1, kind: input, shape index: {}]   ;;  %s1854_s2 = inlined_call_operand.hbm [shape: bf16[128,128], index: 2, kind: input, shape index: {}]   ;;  %s1855_s3 = inlined_call_operand.hbm [shape: bf16[256,128], index: 3, kind: input, shape index: {}]   ;;  %s1856_s4 = inlined_call_operand.hbm [shape: f32[8,384], index: 4, kind: input, shape index: {}]   ;;  %s1857_s5 = inlined_call_operand.hbm [shape: f32[8,128], index: 5, kind: output, shape index: {}]  }
   0x1   :  { %11 = vsyncpa [#allocation6], 0 }
   0x2   :  { %12 = vsyncpa [#allocation9], 0 }
   0x3   :  { %13 = vsyncpa [#allocation4], 0  ;;  %s1675_s18 = smov [#allocation5]   ;;  %s1535_s22 = scalar_lea.hbm %s1853_s1, 9408 }
   0x4   :  { %s29_s19 = sshll.u32 %s1675_s18, 4  ;;  %p1536_p0 = scmp.ne.s32.totalorder %s1853_s1, %s1535_s22  ;;  %s30_s19 = int_to_ptr.vmem [resolvable:$true] %s29_s19 }
   0x5   :  { %p1539_p1 = scmp.lt.u32.totalorder %s1535_s22, %s1853_s1 }
   0x7   :  { %p1541_p2 = pnand %p1539_p1, %p1536_p0 }
   0x9   :  { %1544 = shalt.err (!%p1541_p2)
}
   0xa   :  { %s1545_s27 = scalar_lea.vmem %s30_s19, 9408  ;;  %p1550_p4 = scmp.lt.s32.totalorder %s30_s19, %s30_s19 }
   0xb   :  { %p1546_p3 = scmp.ne.s32.totalorder %s30_s19, %s1545_s27  ;;  %p1551_p5 = scmp.lt.s32.totalorder %s1545_s27, %s1545_s27 }
   0xd   :  { %p1552_p6 = por %p1551_p5, %p1550_p4 }
   0xf   :  { %p1553_p7 = pnand %p1552_p6, %p1546_p3 }
  0x11   :  { %1556 = shalt.err (!%p1553_p7)
}
  0x12   :  { %s1676_s28 = smov 192   ;;  %s1677_s29 = smov 12  }
  0x13   :  { %35 = dma.hbm_to_vmem [thread:$0]  %s1853_s1, 9408, %s30_s19, [#allocation6], %s1676_s28, %s1676_s28, %s1677_s29  }
  0x14   :  { %s1678_s7 = smov [#allocation8]   ;;  %s1679_s9 = smov [#allocation2]  }
  0x15   :  { %s53_s8 = sshll.u32 %s1678_s7, 4  ;;  %s20_s10 = sshll.u32 %s1679_s9, 4  ;;  %s54_s8 = int_to_ptr.vmem [resolvable:$true] %s53_s8  ;;  %s21_s10 = int_to_ptr.vmem [resolvable:$true] %s20_s10 }
  0x16   :  { %s1557_s13 = scalar_lea.hbm %s1855_s3, 2048 }
  0x17   :  { %p1558_p8 = scmp.ne.s32.totalorder %s1855_s3, %s1557_s13  ;;  %p1561_p9 = scmp.lt.u32.totalorder %s1557_s13, %s1855_s3 }
  0x19   :  { %p1563_p10 = pnand %p1561_p9, %p1558_p8 }
  0x1b   :  { %1566 = shalt.err (!%p1563_p10)
}
  0x1c   :  { %s1567_s1 = scalar_lea.vmem %s54_s8, 2048  ;;  %p1572_p12 = scmp.lt.s32.totalorder %s54_s8, %s54_s8 }
  0x1d   :  { %p1568_p11 = scmp.ne.s32.totalorder %s54_s8, %s1567_s1  ;;  %p1573_p13 = scmp.lt.s32.totalorder %s1567_s1, %s1567_s1 }
  0x1f   :  { %p1574_p0 = por %p1573_p13, %p1572_p12 }
  0x21   :  { %p1575_p1 = pnand %p1574_p0, %p1568_p11 }
  0x23   :  { %1578 = shalt.err (!%p1575_p1)
}
  0x24   :  { %s1680_s18 = smov 64   ;;  %s1681_s19 = smov 4  }
  0x25   :  { %59 = dma.hbm_to_vmem [thread:$0]  %s1855_s3, 2048, %s54_s8, [#allocation9], %s1680_s18, %s1680_s18, %s1681_s19  }
  0x26   :  { %s1579_s24 = scalar_lea.hbm %s1852_s0, 512 }
  0x27   :  { %p1580_p2 = scmp.ne.s32.totalorder %s1852_s0, %s1579_s24  ;;  %p1583_p3 = scmp.lt.u32.totalorder %s1579_s24, %s1852_s0 }
  0x29   :  { %p1585_p4 = pnand %p1583_p3, %p1580_p2 }
  0x2b   :  { %1588 = shalt.err (!%p1585_p4)
}
  0x2c   :  { %s1589_s29 = scalar_lea.vmem %s21_s10, 512  ;;  %p1594_p6 = scmp.lt.s32.totalorder %s21_s10, %s21_s10 }
  0x2d   :  { %p1590_p5 = scmp.ne.s32.totalorder %s21_s10, %s1589_s29  ;;  %p1595_p7 = scmp.lt.s32.totalorder %s1589_s29, %s1589_s29 }
  0x2f   :  { %p1596_p8 = por %p1595_p7, %p1594_p6 }
  0x31   :  { %p1597_p9 = pnand %p1596_p8, %p1590_p5 }
  0x33   :  { %1600 = shalt.err (!%p1597_p9)
}
  0x34   :  { %23 = dma.hbm_to_vmem [thread:$0]  %s1852_s0, 512, %s21_s10, [#allocation3]  }
  0x35   :  { %s1682_s6 = smov [#allocation7]   ;;  %s1683_s8 = smov [#allocation10]  }
  0x36   :  { %s41_s7 = sshll.u32 %s1682_s6, 4  ;;  %s66_s9 = sshll.u32 %s1683_s8, 4  ;;  %s42_s7 = int_to_ptr.vmem [resolvable:$true] %s41_s7  ;;  %s67_s9 = int_to_ptr.vmem [resolvable:$true] %s66_s9 }
  0x37   :  { %s1601_s13 = scalar_lea.hbm %s1854_s2, 1024 }
  0x38   :  { %p1602_p10 = scmp.ne.s32.totalorder %s1854_s2, %s1601_s13  ;;  %p1605_p11 = scmp.lt.u32.totalorder %s1601_s13, %s1854_s2 }
  0x3a   :  { %p1607_p12 = pnand %p1605_p11, %p1602_p10 }
  0x3c   :  { %1610 = shalt.err (!%p1607_p12)
}
  0x3d   :  { %s1611_s0 = scalar_lea.vmem %s42_s7, 1024  ;;  %p1616_p0 = scmp.lt.s32.totalorder %s42_s7, %s42_s7 }
  0x3e   :  { %p1612_p13 = scmp.ne.s32.totalorder %s42_s7, %s1611_s0  ;;  %p1617_p1 = scmp.lt.s32.totalorder %s1611_s0, %s1611_s0 }
  0x40   :  { %p1618_p2 = por %p1617_p1, %p1616_p0 }
  0x42   :  { %p1619_p3 = pnand %p1618_p2, %p1612_p13 }
  0x44   :  { %1622 = shalt.err (!%p1619_p3)
}
  0x45   :  { %47 = dma.hbm_to_vmem [thread:$0]  %s1854_s2, 1024, %s42_s7, [#allocation6], %s1680_s18, %s1680_s18, %s1681_s19  }
  0x46   :  { %s1623_s22 = scalar_lea.hbm %s1856_s4, 384 }
  0x47   :  { %p1624_p4 = scmp.ne.s32.totalorder %s1856_s4, %s1623_s22  ;;  %p1627_p5 = scmp.lt.u32.totalorder %s1623_s22, %s1856_s4 }
  0x49   :  { %p1629_p6 = pnand %p1627_p5, %p1624_p4 }
  0x4b   :  { %1632 = shalt.err (!%p1629_p6)
}
  0x4c   :  { %s1633_s27 = scalar_lea.vmem %s67_s9, 384  ;;  %p1638_p8 = scmp.lt.s32.totalorder %s67_s9, %s67_s9 }
  0x4d   :  { %p1634_p7 = scmp.ne.s32.totalorder %s67_s9, %s1633_s27  ;;  %p1639_p9 = scmp.lt.s32.totalorder %s1633_s27, %s1633_s27 }
  0x4f   :  { %p1640_p10 = por %p1639_p9, %p1638_p8 }
  0x51   :  { %p1641_p11 = pnand %p1640_p10, %p1634_p7 }
  0x53   :  { %1644 = shalt.err (!%p1641_p11)
}
  0x54   :  { %69 = dma.hbm_to_vmem [thread:$0]  %s1856_s4, 384, %s67_s9, [#allocation9]  }
  0x55   :  { %1667 = dma.done.wait [#allocation3], 512  }
  0x56   :  { %1668 = vsyncadd [#allocation3], 4294966784 }
  0x57   :  { %1669 = dma.done.wait [#allocation6], 10432  }
  0x58   :  { %1670 = vsyncadd [#allocation6], 4294956864 }
  0x59   :  { %1671 = dma.done.wait [#allocation9], 2432  }
  0x5a   :  { %1672 = vsyncadd [#allocation9], 4294964864  ;;  %v1412_v0 = vld [vmem:[#allocation5 + $0x4] ss:$12 sps:$4 sm:$0xff]   ;;  %v1414_v1 = vld [vmem:[#allocation5] ss:$12 sps:$4 sm:$0xff]  }
  0x5b   :  { %615 = vmatprep.subr.bf16.mxu0 %v1412_v0  ;;  %v1415_v2 = vld [vmem:[#allocation5 + $0x1c] ss:$12 sps:$4 sm:$0xff]   ;;  %v1417_v3 = vld [vmem:[#allocation5 + $0x18] ss:$12 sps:$4 sm:$0xff]   ;;  %v1418_v4 = vld [vmem:[#allocation5 + $0x34] ss:$12 sps:$4 sm:$0xff]  }
  0x5c   :  { %616 = vmatpush1.bf16.msra.mxu0 %v1414_v1  ;;  %v1420_v5 = vld [vmem:[#allocation5 + $0x30] ss:$12 sps:$4 sm:$0xff]   ;;  %v1421_v6 = vld [vmem:[#allocation5 + $0x4c] ss:$12 sps:$4 sm:$0xff]   ;;  %v1423_v9 = vld [vmem:[#allocation5 + $0x48] ss:$12 sps:$4 sm:$0xff]  }
  0x5d   :  { %617 = vmatprep.subr.bf16.mxu0 %v1415_v2  ;;  %v1432_v7 = vld [vmem:[#allocation5 + $0x184] ss:$12 sps:$4 sm:$0xff]   ;;  %v1435_v8 = vld [vmem:[#allocation5 + $0x180] ss:$12 sps:$4 sm:$0xff]   ;;  %v1438_v11 = vld [vmem:[#allocation5 + $0x19c] ss:$12 sps:$4 sm:$0xff]  }
  0x5e   :  { %656 = vmatprep.subr.bf16.mxu1 %v1432_v7  ;;  %v1424_v10 = vld [vmem:[#allocation5 + $0x64] ss:$12 sps:$4 sm:$0xff]   ;;  %v1426_v13 = vld [vmem:[#allocation5 + $0x60] ss:$12 sps:$4 sm:$0xff]   ;;  %v1427_v14 = vld [vmem:[#allocation5 + $0x7c] ss:$12 sps:$4 sm:$0xff]  }
  0x5f   :  { %657 = vmatpush1.bf16.msra.mxu1 %v1435_v8  ;;  %v1441_v12 = vld [vmem:[#allocation5 + $0x198] ss:$12 sps:$4 sm:$0xff]   ;;  %v1444_v15 = vld [vmem:[#allocation5 + $0x1b4] ss:$12 sps:$4 sm:$0xff]   ;;  %v1447_v16 = vld [vmem:[#allocation5 + $0x1b0] ss:$12 sps:$4 sm:$0xff]  }
  0x60   :  { %618 = vmatpush1.bf16.msra.mxu0 %v1417_v3  ;;  %658 = vmatprep.subr.bf16.mxu1 %v1438_v11  ;;  %v1450_v17 = vld [vmem:[#allocation5 + $0x1cc] ss:$12 sps:$4 sm:$0xff]   ;;  %v1430_v19 = vld [vmem:[#allocation5 + $0x94] ss:$12 sps:$4 sm:$0xff]   ;;  %v1456_v21 = vld [vmem:[#allocation5 + $0x1e4] ss:$12 sps:$4 sm:$0xff]  }
  0x61   :  { %619 = vmatprep.subr.bf16.mxu0 %v1418_v4  ;;  %v1429_v18 = vld [vmem:[#allocation5 + $0x78] ss:$12 sps:$4 sm:$0xff]   ;;  %v1453_v20 = vld [vmem:[#allocation5 + $0x1c8] ss:$12 sps:$4 sm:$0xff]   ;;  %v1434_v22 = vld [vmem:[#allocation5 + $0x90] ss:$12 sps:$4 sm:$0xff]  }
  0x62   :  { %v1436_v23 = vld [vmem:[#allocation5 + $0xac] ss:$12 sps:$4 sm:$0xff]   ;;  %v1462_v25 = vld [vmem:[#allocation5 + $0x1fc] ss:$12 sps:$4 sm:$0xff]   ;;  %v1442_v27 = vld [vmem:[#allocation5 + $0xc4] ss:$12 sps:$4 sm:$0xff]  }
  0x63   :  { %659 = vmatpush1.bf16.msra.mxu1 %v1441_v12  ;;  %v1459_v24 = vld [vmem:[#allocation5 + $0x1e0] ss:$12 sps:$4 sm:$0xff]   ;;  %v1440_v26 = vld [vmem:[#allocation5 + $0xa8] ss:$12 sps:$4 sm:$0xff]   ;;  %v1465_v28 = vld [vmem:[#allocation5 + $0x1f8] ss:$12 sps:$4 sm:$0xff]  }
  0x64   :  { %620 = vmatpush1.bf16.msra.mxu0 %v1420_v5  ;;  %660 = vmatprep.subr.bf16.mxu1 %v1444_v15  ;;  %v1468_v29 = vld [vmem:[#allocation5 + $0x214] ss:$12 sps:$4 sm:$0xff]   ;;  %v1448_v31 = vld [vmem:[#allocation5 + $0xdc] ss:$12 sps:$4 sm:$0xff]   ;;  %vm601_vm0 = vcmask 64512   ;;  %vm605_vm1 = vcmask 1043456  }
  0x65   :  { %621 = vmatprep.subr.bf16.mxu0 %v1421_v6  ;;  %v1446_v30 = vld [vmem:[#allocation5 + $0xc0] ss:$12 sps:$4 sm:$0xff]   ;;  %v1471_v32 = vld [vmem:[#allocation5 + $0x210] ss:$12 sps:$4 sm:$0xff]   ;;  %v1452_v37 = vld [vmem:[#allocation5 + $0xd8] ss:$12 sps:$4 sm:$0xff]  }
  0x66   :  { %v89_v33 = vld [vmem:[#allocation2 + $0x18] sm:$0xff]  ;;  %v190_v35 = vld [vmem:[#allocation5 + $0x240] sm:$0xff]  ;;  %v87_v39 = vld [vmem:[#allocation2 + $0x8] sm:$0xff]  ;;  %vm1686_vm2 = vmmov 0   ;;  %s1687_s4 = smov [#allocation11]  }
  0x67   :  { %661 = vmatpush1.bf16.msra.mxu1 %v1447_v16  ;;  %v1474_v34 = vld [vmem:[#allocation5 + $0x22c] ss:$12 sps:$4 sm:$0xff]   ;;  %v1784_v36 = vpack.c.bf16 %v89_v33, %v89_v33  ;;  %v1454_v38 = vld [vmem:[#allocation5 + $0xf4] ss:$12 sps:$4 sm:$0xff]   ;;  %v1231_v41 = vcombine.low %v190_v35, %v190_v35  ;;  %v91_v42 = vpack.c.bf16 %v87_v39, %v87_v39  ;;  %v1232_v43 = vcombine.high %v190_v35, %v190_v35  ;;  %v1458_v44 = vld [vmem:[#allocation5 + $0xf0] ss:$12 sps:$4 sm:$0xff]  }
  0x68   :  { %622 = vmatpush1.bf16.msra.mxu0 %v1423_v9  ;;  %662 = vmatprep.subr.bf16.mxu1 %v1450_v17  ;;  %v1477_v40 = vld [vmem:[#allocation5 + $0x228] ss:$12 sps:$4 sm:$0xff]   ;;  %v1460_v45 = vld [vmem:[#allocation5 + $0x10c] ss:$12 sps:$4 sm:$0xff]   ;;  %v1466_v50 = vld [vmem:[#allocation5 + $0x124] ss:$12 sps:$4 sm:$0xff]  }
  0x69   :  { %623 = vmatprep.subr.bf16.mxu0 %v1424_v10  ;;  %1235 = vmatprep.mubr.msk.bf16.mxu1 %vm601_vm0, %v1784_v36  ;;  %v607_v46 = vsel %vm605_vm1, %v1231_v41, 0  ;;  %v88_v47 = vld [vmem:[#allocation2 + $0x10] sm:$0xff]  ;;  %v1488_v53 = vld [vmem:[#allocation5 + $0xe0] ss:$12 sps:$4 sm:$0xff]   ;;  %v1472_v55 = vld [vmem:[#allocation5 + $0x13c] ss:$12 sps:$4 sm:$0xff]  }
  0x6a   :  { %647 = vmatprep.mubr.bf16.mxu0 %v91_v42  ;;  %v1485_v48 = vld [vmem:[#allocation5 + $0xc8] ss:$12 sps:$4 sm:$0xff]   ;;  %v1790_v51 = vpack.c.bf16 %v88_v47, %v88_v47  ;;  %v1470_v54 = vld [vmem:[#allocation5 + $0x120] ss:$12 sps:$4 sm:$0xff]   ;;  %v1491_v57 = vld [vmem:[#allocation5 + $0xf8] ss:$12 sps:$4 sm:$0xff]  }
  0x6b   :  { %663 = vmatpush1.bf16.msra.mxu1 %v1453_v20  ;;  %v1464_v49 = vld [vmem:[#allocation5 + $0x108] ss:$12 sps:$4 sm:$0xff]   ;;  %v1489_v56 = vld [vmem:[#allocation5 + $0x20] ss:$12 sps:$4 sm:$0xff]   ;;  %v1476_v58 = vld [vmem:[#allocation5 + $0x138] ss:$12 sps:$4 sm:$0xff]  }
  0x6c   :  { %624 = vmatpush1.bf16.msra.mxu0 %v1426_v13  ;;  %664 = vmatprep.subr.bf16.mxu1 %v1456_v21  ;;  %v1487_v52 = vld [vmem:[#allocation5 + $0x8] ss:$12 sps:$4 sm:$0xff]   ;;  %v1492_v60 = vld [vmem:[#allocation5 + $0x38] ss:$12 sps:$4 sm:$0xff]   ;;  %v1494_v61 = vld [vmem:[#allocation5 + $0x110] ss:$12 sps:$4 sm:$0xff]  }
  0x6d   :  { %625 = vmatprep.subr.bf16.mxu0 %v1427_v14  ;;  %v1478_v59 = vld [vmem:[#allocation5 + $0x154] ss:$12 sps:$4 sm:$0xff]   ;;  %v1481_v62 = vld [vmem:[#allocation5 + $0x150] ss:$12 sps:$4 sm:$0xff]   ;;  %v1483_v63 = vld [vmem:[#allocation5 + $0x16c] ss:$12 sps:$4 sm:$0xff]  }
  0x6e   :  { %v1495_v0 = vld [vmem:[#allocation5 + $0x50] ss:$12 sps:$4 sm:$0xff]   ;;  %v1497_v1 = vld [vmem:[#allocation5 + $0x128] ss:$12 sps:$4 sm:$0xff]   ;;  %v86_v3 = vld [vmem:[#allocation2] sm:$0xff]  ;;  %v1684_v10 = vmov 0  }
  0x6f   :  { %665 = vmatpush1.bf16.msra.mxu1 %v1459_v24  ;;  %v1486_v2 = vld [vmem:[#allocation5 + $0x168] ss:$12 sps:$4 sm:$0xff]   ;;  %v1500_v6 = vld [vmem:[#allocation5 + $0x140] ss:$12 sps:$4 sm:$0xff]   ;;  %v90_v7 = vpack.c.bf16 %v86_v3, %v86_v3  ;;  %v1503_v9 = vld [vmem:[#allocation5 + $0x158] ss:$12 sps:$4 sm:$0xff]  }
  0x70   :  { %626 = vmatpush1.bf16.msra.mxu0 %v1429_v18  ;;  %666 = vmatprep.subr.bf16.mxu1 %v1462_v25  ;;  %v1498_v4 = vld [vmem:[#allocation5 + $0x68] ss:$12 sps:$4 sm:$0xff]   ;;  %v1501_v8 = vld [vmem:[#allocation5 + $0x80] ss:$12 sps:$4 sm:$0xff]   ;;  %v1504_v12 = vld [vmem:[#allocation5 + $0x98] ss:$12 sps:$4 sm:$0xff]  }
  0x71   :  { %627 = vmatprep.subr.bf16.mxu0 %v1430_v19  ;;  %v1490_v5 = vld [vmem:[#allocation5 + $0x188] ss:$12 sps:$4 sm:$0xff]   ;;  %v1493_v11 = vld [vmem:[#allocation5 + $0x1a0] ss:$12 sps:$4 sm:$0xff]   ;;  %v1506_v13 = vld [vmem:[#allocation5 + $0x170] ss:$12 sps:$4 sm:$0xff]  }
  0x72   :  { %v1496_v14 = vld [vmem:[#allocation5 + $0x1b8] ss:$12 sps:$4 sm:$0xff]   ;;  %v1507_v15 = vld [vmem:[#allocation5 + $0xb0] ss:$12 sps:$4 sm:$0xff]   ;;  %v1685_v18 = vmov 0.0   ;;  %s1148_s19 = sshll.u32 %s1687_s4, 4  ;;  %s1149_s19 = int_to_ptr.vmem [resolvable:$true] %s1148_s19 }
  0x73   :  { %667 = vmatpush1.bf16.msra.mxu1 %v1465_v28  ;;  %v1499_v16 = vld [vmem:[#allocation5 + $0x1d0] ss:$12 sps:$4 sm:$0xff]   ;;  %v1502_v19 = vld [vmem:[#allocation5 + $0x1e8] ss:$12 sps:$4 sm:$0xff]   ;;  %v1505_v21 = vld [vmem:[#allocation5 + $0x200] ss:$12 sps:$4 sm:$0xff]   ;;  %p1650_p13 = scmp.lt.s32.totalorder %s1149_s19, %s1149_s19 }
  0x74   :  { %628 = vmatpush1.bf16.msra.mxu0 %v1434_v22  ;;  %668 = vmatprep.subr.bf16.mxu1 %v1468_v29  ;;  %v1511_v17 = vld [vmem:[#allocation7] sm:$0xff]   ;;  %v1512_v20 = vld [vmem:[#allocation7 + $0x8] sm:$0xff]   ;;  %v1513_v22 = vld [vmem:[#allocation7 + $0x10] sm:$0xff]   ;;  %s1645_s28 = scalar_lea.vmem %s1149_s19, 128 }
  0x75   :  { %629 = vmatprep.subr.bf16.mxu0 %v1436_v23  ;;  %v1508_v23 = vld [vmem:[#allocation5 + $0x218] ss:$12 sps:$4 sm:$0xff]   ;;  %v1509_v25 = vld [vmem:[#allocation5 + $0x230] ss:$12 sps:$4 sm:$0xff]   ;;  %p1646_p12 = scmp.ne.s32.totalorder %s1149_s19, %s1645_s28  ;;  %p1651_p0 = scmp.lt.s32.totalorder %s1645_s28, %s1645_s28 }
  0x76   :  { %v1514_v24 = vld [vmem:[#allocation7 + $0x18] sm:$0xff]   ;;  %v1516_v29 = vld [vmem:[#allocation7 + $0x28] sm:$0xff]   ;;  %v1517_v35 = vld [vmem:[#allocation7 + $0x30] sm:$0xff]  }
  0x77   :  { %669 = vmatpush1.bf16.msra.mxu1 %v1471_v32  ;;  %v192_v32 = vld [vmem:[#allocation10] ss:$8 sm:$0x7]  ;;  %p1652_p1 = por %p1651_p0, %p1650_p13 }
  0x78   :  { %630 = vmatpush1.bf16.msra.mxu0 %v1440_v26  ;;  %670 = vmatprep.subr.bf16.mxu1 %v1474_v34  ;;  %v1510_v26 = vld [vmem:[#allocation5 + $0x248] ss:$0 sps:$4 sm:$0xff]   ;;  %v1519_v3 = vld [vmem:[#allocation8] sm:$0xff]  }
  0x79   :  { %631 = vmatprep.subr.bf16.mxu0 %v1442_v27  ;;  %v1515_v27 = vld [vmem:[#allocation7 + $0x20] sm:$0xff]   ;;  %v613_v28 = vsel %vm605_vm1, %v1510_v26, 0  ;;  %p1653_p2 = pnand %p1652_p1, %p1646_p12 }
  0x7b   :  { %671 = vmatpush1.bf16.msra.mxu1 %v1477_v40 }
  0x7c   :  { %632 = vmatpush1.bf16.msra.mxu0 %v1446_v30  ;;  %1234 = vmatprep.subr.msk.bf16.mxu1 %vm605_vm1, %v1232_v43  ;;  %v194_v30 = vlaneseq }
  0x7d   :  { %633 = vmatprep.subr.bf16.mxu0 %v1448_v31 }
  0x7e   :  { %v195_v31 = vshrl.u32 %v194_v30, 7 }
  0x7f   :  { %673 = vmatpush1.bf16.msra.mxu1 %v607_v46 }
  0x80   :  { %634 = vmatpush1.bf16.msra.mxu0 %v1452_v37  ;;  %1261 = vmatprep.subr.bf16.mxu1 %v1485_v48  ;;  %v196_v33 = vsub.s32 0, %v195_v31  ;;  %v200_v41 = vsub.s32 1, %v195_v31 }
  0x81   :  { %635 = vmatprep.subr.bf16.mxu0 %v1454_v38 }
  0x82   :  { %689 = vmatmul.mubr.bf16.vlgmr.msra.gmra.mrb[0].mxu1 %v1790_v51  ;;  %v197_v34 = vrot.slane %v192_v32, %v196_v33 }
  0x83   :  { %1262 = vmatpush3.bf16.msra.mxu1 %v1487_v52  ;;  %729 = vmatprep.mubr.bf16.mxu1 %v91_v42  ;;  %v201_v42 = vrot.slane %v192_v32, %v200_v41 }
  0x84   :  { %636 = vmatpush1.bf16.msra.mxu0 %v1458_v44  ;;  %1263 = vmatprep.subr.bf16.mxu1 %v1488_v53 }
  0x85   :  { %637 = vmatprep.subr.bf16.mxu0 %v1460_v45 }
  0x87   :  { %1264 = vmatpush3.bf16.msra.mxu1 %v1489_v56 }
  0x88   :  { %638 = vmatpush1.bf16.msra.mxu0 %v1464_v49  ;;  %1265 = vmatprep.subr.bf16.mxu1 %v1491_v57 }
  0x89   :  { %639 = vmatprep.subr.bf16.mxu0 %v1466_v50 }
  0x8b   :  { %1266 = vmatpush3.bf16.msra.mxu1 %v1492_v60 }
  0x8c   :  { %640 = vmatpush1.bf16.msra.mxu0 %v1470_v54  ;;  %1267 = vmatprep.subr.bf16.mxu1 %v1494_v61 }
  0x8d   :  { %641 = vmatprep.subr.bf16.mxu0 %v1472_v55 }
  0x8f   :  { %1268 = vmatpush3.bf16.msra.mxu1 %v1495_v0 }
  0x90   :  { %642 = vmatpush1.bf16.msra.mxu0 %v1476_v58  ;;  %1269 = vmatprep.subr.bf16.mxu1 %v1497_v1  ;;  %v204_v58 = vsub.s32 2, %v195_v31 }
  0x91   :  { %643 = vmatprep.subr.bf16.mxu0 %v1478_v59 }
  0x92   :  { %v205_v59 = vrot.slane %v192_v32, %v204_v58 }
  0x93   :  { %1270 = vmatpush3.bf16.msra.mxu1 %v1498_v4 }
  0x94   :  { %644 = vmatpush1.bf16.msra.mxu0 %v1481_v62  ;;  %1271 = vmatprep.subr.bf16.mxu1 %v1500_v6  ;;  %v1521_v6 = vld [vmem:[#allocation8 + $0x10] sm:$0xff]  }
  0x95   :  { %645 = vmatprep.subr.bf16.mxu0 %v1483_v63 }
  0x97   :  { %1272 = vmatpush3.bf16.msra.mxu1 %v1501_v8  ;;  %v1523_v8 = vld [vmem:[#allocation8 + $0x20] sm:$0xff]  }
  0x98   :  { %646 = vmatpush1.bf16.msra.mxu0 %v1486_v2  ;;  %1273 = vmatprep.subr.bf16.mxu1 %v1503_v9  ;;  %v1524_v9 = vld [vmem:[#allocation8 + $0x28] sm:$0xff]  }
  0x99   :  { %737 = vmatprep.subr.bf16.mxu0 %v1684_v10 }
  0x9b   :  { %648 = vmatmul.mubr.bf16.vlgmr.msra.gmra.mrb[0].mxu0 %v90_v7  ;;  %1274 = vmatpush3.bf16.msra.mxu1 %v1504_v12  ;;  %v1527_v12 = vld [vmem:[#allocation8 + $0x40] sm:$0xff]  }
  0x9c   :  { %738 = vmatpush1.bf16.msra.mxu0 %v1490_v5  ;;  %1236 = vmatprep.mubr.msk.bf16.mxu0 %vm601_vm0, %v1784_v36  ;;  %v1518_v36 = vld [vmem:[#allocation7 + $0x38] sm:$0xff]   ;;  %v1520_v5 = vld [vmem:[#allocation8 + $0x8] sm:$0xff]  }
  0x9d   :  { %739 = vmatprep.subr.bf16.mxu0 %v1684_v10  ;;  %1275 = vmatprep.subr.bf16.mxu1 %v1506_v13  ;;  %v1528_v13 = vld [vmem:[#allocation8 + $0x48] sm:$0xff]  }
  0x9f   :  { %1276 = vmatpush3.bf16.msra.mxu1 %v1507_v15  ;;  %v1530_v15 = vld [vmem:[#allocation8 + $0x58] sm:$0xff]  }
  0xa0   :  { %740 = vmatpush1.bf16.msra.mxu0 %v1493_v11  ;;  %1319 = vmatprep.subr.bf16.mxu1 %v1685_v18  ;;  %v1526_v11 = vld [vmem:[#allocation8 + $0x38] sm:$0xff]  }
  0xa1   :  { %741 = vmatprep.subr.bf16.mxu0 %v1684_v10 }
  0xa2   :  { %730 = vmatmul.mubr.bf16.vlgmr.msra.gmra.mrb[4].mxu1 %v90_v7  ;;  %v1522_v7 = vld [vmem:[#allocation8 + $0x18] sm:$0xff]  }
  0xa3   :  { %1320 = vmatpush3.bf16.msra.mxu1 %v1511_v17  ;;  %1335 = vmatprep.mubr.msk.bf16.mxu1 %vm1686_vm2, %v1685_v18 }
  0xa4   :  { %742 = vmatpush1.bf16.msra.mxu0 %v1496_v14  ;;  %1321 = vmatprep.subr.bf16.mxu1 %v1685_v18  ;;  %v1529_v14 = vld [vmem:[#allocation8 + $0x50] sm:$0xff]  }
  0xa5   :  { %743 = vmatprep.subr.bf16.mxu0 %v1684_v10 }
  0xa7   :  { %1322 = vmatpush3.bf16.msra.mxu1 %v1512_v20 }
  0xa8   :  { %744 = vmatpush1.bf16.msra.mxu0 %v1499_v16  ;;  %1323 = vmatprep.subr.bf16.mxu1 %v1685_v18  ;;  %v1531_v16 = vld [vmem:[#allocation8 + $0x60] sm:$0xff]  }
  0xa9   :  { %745 = vmatprep.subr.bf16.mxu0 %v1684_v10 }
  0xab   :  { %1324 = vmatpush3.bf16.msra.mxu1 %v1513_v22 }
  0xac   :  { %746 = vmatpush1.bf16.msra.mxu0 %v1502_v19  ;;  %1325 = vmatprep.subr.bf16.mxu1 %v1685_v18  ;;  %v1533_v19 = vld [vmem:[#allocation8 + $0x70] sm:$0xff]  }
  0xad   :  { %747 = vmatprep.subr.bf16.mxu0 %v1684_v10 }
  0xaf   :  { %1326 = vmatpush3.bf16.msra.mxu1 %v1514_v24 }
  0xb0   :  { %748 = vmatpush1.bf16.msra.mxu0 %v1505_v21  ;;  %1327 = vmatprep.subr.bf16.mxu1 %v1685_v18  ;;  %v781_v21 = vld [vmem:[#allocation10 + $0x1] ss:$0 sm:$0xff] }
  0xb1   :  { %749 = vmatprep.subr.bf16.mxu0 %v1684_v10 }
  0xb3   :  { %1328 = vmatpush3.bf16.msra.mxu1 %v1515_v27 }
  0xb4   :  { %750 = vmatpush1.bf16.msra.mxu0 %v1508_v23  ;;  %1329 = vmatprep.subr.bf16.mxu1 %v1685_v18 }
  0xb5   :  { %751 = vmatprep.subr.bf16.mxu0 %v1684_v10 }
  0xb7   :  { %1330 = vmatpush3.bf16.msra.mxu1 %v1516_v29 }
  0xb8   :  { %752 = vmatpush1.bf16.msra.mxu0 %v1509_v25  ;;  %1331 = vmatprep.subr.bf16.mxu1 %v1685_v18 }
  0xb9   :  { %753 = vmatprep.subr.bf16.mxu0 %v1684_v10  ;;  %v1525_v10 = vld [vmem:[#allocation8 + $0x30] sm:$0xff]  }
  0xbb   :  { %1332 = vmatpush3.bf16.msra.mxu1 %v1517_v35 }
  0xbc   :  { %754 = vmatpush1.bf16.msra.mxu0 %v613_v28  ;;  %1333 = vmatprep.subr.bf16.mxu1 %v1685_v18 }
  0xbd   :  { %1339 = vmatprep.subr.bf16.mxu0 %v1685_v18 }
  0xbf   :  { %770 = vmatmul.mubr.bf16.vlgmr.msra.gmra.mrb[4].mxu0 %v1790_v51  ;;  %1334 = vmatpush3.bf16.msra.mxu1 %v1518_v36 }
  0xc0   :  { %1340 = vmatpush3.bf16.msra.mxu0 %v1511_v17  ;;  %1359 = vmatprep.subr.bf16.mxu1 %v1685_v18  ;;  %v1532_v17 = vld [vmem:[#allocation8 + $0x68] sm:$0xff]  }
  0xc1   :  { %1341 = vmatprep.subr.bf16.mxu0 %v1685_v18  ;;  %1355 = vmatprep.mubr.msk.bf16.mxu0 %vm1686_vm2, %v1685_v18 }
  0xc4   :  { %1342 = vmatpush3.bf16.msra.mxu0 %v1512_v20  ;;  %v1534_v20 = vld [vmem:[#allocation8 + $0x78] sm:$0xff]  }
  0xc5   :  { %1343 = vmatprep.subr.bf16.mxu0 %v1685_v18 }
  0xc8   :  { %1344 = vmatpush3.bf16.msra.mxu0 %v1513_v22 }
  0xc9   :  { %1345 = vmatprep.subr.bf16.mxu0 %v1685_v18 }
  0xcc   :  { %1346 = vmatpush3.bf16.msra.mxu0 %v1514_v24 }
  0xcd   :  { %1347 = vmatprep.subr.bf16.mxu0 %v1685_v18 }
  0xd0   :  { %1348 = vmatpush3.bf16.msra.mxu0 %v1515_v27 }
  0xd1   :  { %1349 = vmatprep.subr.bf16.mxu0 %v1685_v18 }
  0xd4   :  { %1350 = vmatpush3.bf16.msra.mxu0 %v1516_v29 }
  0xd5   :  { %1351 = vmatprep.subr.bf16.mxu0 %v1685_v18 }
  0xd8   :  { %1352 = vmatpush3.bf16.msra.mxu0 %v1517_v35 }
  0xd9   :  { %1353 = vmatprep.subr.bf16.mxu0 %v1685_v18 }
  0xdc   :  { %1354 = vmatpush3.bf16.msra.mxu0 %v1518_v36 }
  0xdd   :  { %1379 = vmatprep.subr.bf16.mxu0 %v1685_v18 }
 0x155   :  { %v690_v37 = vpop.f32.mrb[0].mxu1 }
 0x156   :  { %v692_v38 = vpop.f32.mrb[1].mxu1 }
 0x157   :  { %v694_v39 = vpop.f32.mrb[2].mxu1 }
 0x158   :  { %v695_v40 = vpop.f32.mrb[3].mxu1 }
 0x16e   :  { %v649_v43 = vpop.f32.mrb[0].mxu0 }
 0x16f   :  { %v650_v44 = vadd.f32 %v649_v43, %v197_v34  ;;  %v651_v45 = vpop.f32.mrb[1].mxu0  ;;  %v1139_v43 = vld [vmem:[#allocation10 + $0x2] ss:$0 sm:$0xff] }
 0x170   :  { %v652_v46 = vadd.f32 %v651_v45, %v201_v42  ;;  %v653_v47 = vpop.f32.mrb[2].mxu0 }
 0x171   :  { %v1819_v48 = vadd.f32 %v690_v37, %v650_v44  ;;  %v654_v49 = vpop.f32.mrb[3].mxu0 }
 0x172   :  { %v693_v50 = vadd.f32 %v692_v38, %v652_v46 }
 0x174   :  { %v777_v51 = vmax.f32 %v693_v50, 0.0 }
 0x175   :  { %v1277_v53 = vpop.f32.mrb[4].mxu1 }
 0x176   :  { %v778_v52 = vpack.c.bf16 %v777_v51, %v777_v51  ;;  %v1278_v54 = vpop.f32.mrb[5].mxu1 }
 0x177   :  { %v1279_v55 = vadd.f32 %v1278_v54, %v1277_v53  ;;  %v1280_v56 = vpop.f32.mrb[6].mxu1 }
 0x178   :  { %1336 = vmatmul.mubr.bf16.vlgmr.msra.gmra.mrb[8].mxu1 %v778_v52  ;;  %v1281_v57 = vpop.f32.mrb[7].mxu1 }
 0x179   :  { %1375 = vmatprep.mubr.msk.bf16.mxu1 %vm1686_vm2, %v1685_v18  ;;  %v732_v60 = vadd.f32 %v1279_v55, %v205_v59  ;;  %1360 = vmatpush3.bf16.msra.mxu1 %v1527_v12 }
 0x17a   :  { %1361 = vmatprep.subr.bf16.mxu1 %v1685_v18 }
 0x17d   :  { %1362 = vmatpush3.bf16.msra.mxu1 %v1528_v13 }
 0x17e   :  { %1363 = vmatprep.subr.bf16.mxu1 %v1685_v18 }
 0x181   :  { %1364 = vmatpush3.bf16.msra.mxu1 %v1529_v14 }
 0x182   :  { %1365 = vmatprep.subr.bf16.mxu1 %v1685_v18 }
 0x185   :  { %1366 = vmatpush3.bf16.msra.mxu1 %v1530_v15 }
 0x186   :  { %1367 = vmatprep.subr.bf16.mxu1 %v1685_v18 }
 0x189   :  { %1368 = vmatpush3.bf16.msra.mxu1 %v1531_v16 }
 0x18a   :  { %1369 = vmatprep.subr.bf16.mxu1 %v1685_v18 }
 0x18d   :  { %1370 = vmatpush3.bf16.msra.mxu1 %v1532_v17 }
 0x18e   :  { %1371 = vmatprep.subr.bf16.mxu1 %v1685_v18 }
 0x191   :  { %1372 = vmatpush3.bf16.msra.mxu1 %v1533_v19 }
 0x192   :  { %v771_v61 = vpop.f32.mrb[4].mxu0  ;;  %1373 = vmatprep.subr.bf16.mxu1 %v1685_v18 }
 0x193   :  { %v772_v62 = vadd.f32 %v771_v61, %v732_v60  ;;  %v773_v63 = vpop.f32.mrb[5].mxu0 }
 0x194   :  { %v774_v0 = vpop.f32.mrb[6].mxu0 }
 0x195   :  { %v779_v1 = vmax.f32 %v772_v62, 0.0  ;;  %v775_v2 = vpop.f32.mrb[7].mxu0  ;;  %1374 = vmatpush3.bf16.msra.mxu1 %v1534_v20 }
 0x197   :  { %v780_v4 = vpack.c.bf16 %v779_v1, %v779_v1 }
 0x199   :  { %1356 = vmatmul.mubr.bf16.vlgmr.msra.gmra.mrb[8].mxu0 %v780_v4 }
 0x19a   :  { %1380 = vmatpush3.bf16.msra.mxu0 %v1519_v3  ;;  %1395 = vmatprep.mubr.msk.bf16.mxu0 %vm1686_vm2, %v1685_v18 }
 0x19b   :  { %1381 = vmatprep.subr.bf16.mxu0 %v1685_v18 }
 0x19e   :  { %1382 = vmatpush3.bf16.msra.mxu0 %v1520_v5 }
 0x19f   :  { %1383 = vmatprep.subr.bf16.mxu0 %v1685_v18 }
 0x1a2   :  { %1384 = vmatpush3.bf16.msra.mxu0 %v1521_v6 }
 0x1a3   :  { %1385 = vmatprep.subr.bf16.mxu0 %v1685_v18 }
 0x1a6   :  { %1386 = vmatpush3.bf16.msra.mxu0 %v1522_v7 }
 0x1a7   :  { %1387 = vmatprep.subr.bf16.mxu0 %v1685_v18 }
 0x1aa   :  { %1388 = vmatpush3.bf16.msra.mxu0 %v1523_v8 }
 0x1ab   :  { %1389 = vmatprep.subr.bf16.mxu0 %v1685_v18 }
 0x1ae   :  { %1390 = vmatpush3.bf16.msra.mxu0 %v1524_v9 }
 0x1af   :  { %1391 = vmatprep.subr.bf16.mxu0 %v1685_v18 }
 0x1b2   :  { %1392 = vmatpush3.bf16.msra.mxu0 %v1525_v10 }
 0x1b3   :  { %1393 = vmatprep.subr.bf16.mxu0 %v1685_v18 }
 0x1b6   :  { %1394 = vmatpush3.bf16.msra.mxu0 %v1526_v11 }
 0x24b   :  { %v880_v22 = vpop.f32.mrb[8].mxu1 }
 0x24c   :  { %v881_v23 = vadd.f32 %v880_v22, %v781_v21  ;;  %v1337_v24 = vpop.f32.mrb[9].mxu1 }
 0x24d   :  { %v883_v25 = vpop.f32.mrb[10].mxu1 }
 0x24e   :  { %v886_v26 = vmax.f32 %v881_v23, 0.0  ;;  %v1338_v27 = vpop.f32.mrb[11].mxu1 }
 0x250   :  { %v887_v28 = vpack.c.bf16 %v886_v26, %v886_v26 }
 0x252   :  { %1396 = vmatmul.mubr.bf16.vlgmr.msra.gmra.mrb[12].mxu0 %v887_v28 }
 0x26c   :  { %v922_v29 = vpop.f32.mrb[8].mxu0 }
 0x26d   :  { %v923_v30 = vadd.f32 %v922_v29, %v781_v21  ;;  %v1357_v31 = vpop.f32.mrb[9].mxu0 }
 0x26e   :  { %v925_v32 = vpop.f32.mrb[10].mxu0 }
 0x26f   :  { %v928_v33 = vmax.f32 %v923_v30, 0.0  ;;  %v1358_v34 = vpop.f32.mrb[11].mxu0 }
 0x271   :  { %v929_v35 = vpack.c.bf16 %v928_v33, %v928_v33 }
 0x273   :  { %1376 = vmatmul.mubr.bf16.vlgmr.msra.gmra.mrb[12].mxu1 %v929_v35 }
 0x325   :  { %v1132_v18 = vpop.f32.mrb[12].mxu0 }
 0x326   :  { %v1397_v36 = vpop.f32.mrb[13].mxu0 }
 0x327   :  { %v1135_v37 = vpop.f32.mrb[14].mxu0 }
 0x328   :  { %v1398_v38 = vpop.f32.mrb[15].mxu0 }
 0x346   :  { %v1044_v39 = vpop.f32.mrb[12].mxu1 }
 0x347   :  { %v1133_v40 = vadd.f32 %v1132_v18, %v1044_v39  ;;  %v1377_v41 = vpop.f32.mrb[13].mxu1 }
 0x348   :  { %v1047_v42 = vpop.f32.mrb[14].mxu1 }
 0x349   :  { %v1138_v44 = vadd.f32 %v1133_v40, %v1819_v48  ;;  %v1378_v45 = vpop.f32.mrb[15].mxu1 }
 0x34b   :  { %v1140_v46 = vadd.f32 %v1139_v43, %v1138_v44 }
 0x34d   :  { %1141 = vst [vmem:[#allocation11] sm:$0xff] %v1140_v46 }
 0x34e   :  { %1656 = shalt.err (!%p1653_p2)
}
 0x34f   :  { %s1657_s30 = scalar_lea.hbm %s1857_s5, 128 }
 0x350   :  { %p1658_p3 = scmp.ne.s32.totalorder %s1857_s5, %s1657_s30  ;;  %p1661_p4 = scmp.lt.u32.totalorder %s1657_s30, %s1857_s5 }
 0x352   :  { %p1663_p5 = pnand %p1661_p4, %p1658_p3 }
 0x354   :  { %1666 = shalt.err (!%p1663_p5)
}
 0x355   :  { %1151 = dma.vmem_to_hbm [thread:$0]  %s1149_s19, 128, %s1857_s5, [#allocation4]  }
 0x356   :  { %1673 = dma.done.wait [#allocation4], 128  }
 0x357   :  { %1674 = vsyncadd [#allocation4], 4294967168 }
 0x358   :  { %1155 = vsyncpa [#allocation3], 1 }
 0x359   :  { %1156 = vsyncpa [#allocation6], 1 }
 0x35a   :  { %1157 = vsyncpa [#allocation9], 1 }
 0x35b   :  { %1158 = vsyncpa [#allocation4], 1 }

</bundles_post_ra>
